<compile_context>
chip_gen: v7x
topology: tpu7x:2x2x1
jax: 0.10.0
libtpu: 0.0.40
codegen_flags: <defaults>
</compile_context>

<pallas_src>
import functools

import jax
import jax.numpy as jnp
from jax import lax
from jax.experimental import pallas as pl
from jax.experimental.pallas import tpu as pltpu


def _round_up(x, m):
    return (x + m - 1) // m * m


def _num_tensorcores():
    """TensorCores per chip: 2 on v7x, 1 on v5e/v6e (split the grid only on v7x)."""
    try:
        kind = jax.devices()[0].device_kind.lower()
    except Exception:
        return 1
    return 2 if "v7" in kind else 1


def _spatial_conv_kernel(x_ref, w_ref, o_ref, patches_ref, *,
                         c_in, kh, kw, w_in, l_pad, nb, k_taps, k_pad):
    """One grid step = `nb` images, fused into a single MXU contraction.

    x_ref       : VMEM (nb, c_in, hw_pad)        flattened-spatial input (zero padded)
    w_ref       : VMEM (c_out_pad, k_pad)        weights + bias column (zero padded)
    o_ref       : VMEM (1, c_out_pad, nb*l_pad)  lane-dense output slab
    patches_ref : VMEM (k_pad, nb*l_pad)         im2col scratch
    """
    cols = nb * l_pad

    # Zero the K-padding rows (so the matching zero weight columns never
    # multiply VMEM garbage) and write the constant-1 row that folds the bias
    # into the matmul.
    if k_pad > k_taps + 1:
        patches_ref[pl.ds(k_taps + 1, k_pad - k_taps - 1), :] = jnp.zeros(
            (k_pad - k_taps - 1, cols), dtype=patches_ref.dtype)
    patches_ref[pl.ds(k_taps, 1), :] = jnp.ones((1, cols), dtype=patches_ref.dtype)

    # im2col: each conv tap (ci, i, j) is a static lane shift d = i*W + j of the
    # flattened input row; read it at ref level (lane-shifted load, no VPU
    # rotate/select chains on a traced array) straight into its scratch row.
    # Images of the step are packed along the lane axis at 128-aligned offsets.
    # NOTE: nb and the tap count are tiny here; switch the batch loop to
    # lax.fori_loop if nb ever grows large (bound live ranges).
    for n in range(nb):
        x_img = x_ref.at[n]                                 # (c_in, hw_pad) view
        col0 = n * l_pad                                    # multiple of 128
        k = 0
        for ci in range(c_in):
            for i in range(kh):
                for j in range(kw):
                    d = i * w_in + j
                    patches_ref[pl.ds(k, 1), pl.ds(col0, l_pad)] = (
                        x_img[pl.ds(ci, 1), pl.ds(d, l_pad)])
                    k += 1

    # Single MXU contraction for the whole step (bias folded in via the 1-row).
    acc = jnp.dot(w_ref[...], patches_ref[...],
                  preferred_element_type=jnp.float32)       # (c_out_pad, cols)
    o_ref[0] = acc.astype(o_ref.dtype)


def spatial_conv(x, weight, bias):
    """Pallas equivalent of SpatialConv.forward: transpose(Conv2d(x), 1, 2).

    x      : (N, C_in, H, W)
    weight : (C_out, C_in, KH, KW)   valid padding, stride 1
    bias   : (C_out,)
    returns (N, H_out, C_out, W_out)
    """
    n, c_in, h, w = x.shape
    c_out, c_in_w, kh, kw = weight.shape
    assert c_in == c_in_w
    h_out, w_out = h - kh + 1, w - kw + 1

    # ---- wrapper-side layout plumbing (reshape / zero-pad, cheap) ---------
    # Flatten spatial dims; conv tap (i, j) becomes a lane shift i*W + j.
    # Padding the lane axis keeps every in-kernel window load and the output
    # store on full multiples of 128 lanes.
    l_pad = _round_up(h_out * w, 128)                 # lane width per image
    max_shift = (kh - 1) * w + (kw - 1)
    hw_pad = _round_up(max_shift + l_pad, 128)
    x_flat = jnp.pad(x.reshape(n, c_in, h * w),
                     ((0, 0), (0, 0), (0, hw_pad - h * w)))

    k_taps = c_in * kh * kw
    k_pad = _round_up(k_taps + 1, 8)                  # taps + 1 bias row, 8-aligned
    c_out_pad = _round_up(c_out, 8)                   # full-sublane output tiles

    # Weight matrix with the bias folded in as an extra column (contracted
    # against the constant-1 patches row); zero-padded to (c_out_pad, k_pad).
    # TODO(synk): if inputs move to bf16 in production, keep weights/patches in
    # bf16 for the MXU (the bias column then also rounds to bf16; accumulation
    # stays f32 via preferred_element_type).
    w_mat = jnp.zeros((c_out_pad, k_pad), dtype=x.dtype)
    w_mat = w_mat.at[:c_out, :k_taps].set(weight.reshape(c_out, k_taps).astype(x.dtype))
    w_mat = w_mat.at[:c_out, k_taps].set(bias.astype(x.dtype))

    # Split the grid only where a second TensorCore exists (v7x); otherwise the
    # whole batch is one step (extra steps are pure overhead on 1-TC chips).
    tc = _num_tensorcores()
    g = tc if (tc > 1 and n % tc == 0) else 1
    nb = n // g
    cols = nb * l_pad

    kernel = functools.partial(
        _spatial_conv_kernel,
        c_in=c_in, kh=kh, kw=kw, w_in=w, l_pad=l_pad, nb=nb,
        k_taps=k_taps, k_pad=k_pad)

    # VMEM footprint per step is a few KiB; no vmem_limit_bytes / H-tiling
    # needed (revisit with a KH-1 row halo, half-size blocks on v7x, if
    # C_in*H*W ever grows).
    out_blocks = pl.pallas_call(
        kernel,
        out_shape=jax.ShapeDtypeStruct((g, c_out_pad, cols), x.dtype),
        grid_spec=pltpu.PrefetchScalarGridSpec(
            num_scalar_prefetch=0,
            grid=(g,),
            in_specs=[
                pl.BlockSpec((nb, c_in, hw_pad), lambda b: (b, 0, 0)),
                pl.BlockSpec((c_out_pad, k_pad), lambda b: (0, 0)),
            ],
            out_specs=pl.BlockSpec((1, c_out_pad, cols), lambda b: (b, 0, 0)),
            scratch_shapes=[pltpu.VMEM((k_pad, cols), x.dtype)],
        ),
        compiler_params=pltpu.CompilerParams(
            dimension_semantics=("parallel",)),
    )(x_flat, w_mat)

    # ---- wrapper-side de-interleave + crop + transpose (layout plumbing) ---
    out = out_blocks.reshape(g, c_out_pad, nb, l_pad)
    out = jnp.transpose(out, (0, 2, 1, 3)).reshape(n, c_out_pad, l_pad)
    out = out[:, :c_out, :h_out * w].reshape(n, c_out, h_out, w)[:, :, :, :w_out]
    return jnp.transpose(out, (0, 2, 1, 3))            # (N, H_out, C_out, W_out)


if __name__ == "__main__":
    # Module config equivalent: values_dict = {'kernel': 3, 'channels_out': 4},
    # channel_in = 1.
    N, C_IN, H, W = 2, 1, 16, 16
    C_OUT, KH, KW = 4, 3, 3

    key = jax.random.PRNGKey(0)
    kx, kw_, kb = jax.random.split(key, 3)

    x = jax.random.normal(kx, (N, C_IN, H, W), dtype=jnp.float32)

    # Deterministic Conv2d-style init: uniform(-1/sqrt(fan_in), 1/sqrt(fan_in)).
    fan_in = C_IN * KH * KW
    bound = 1.0 / jnp.sqrt(jnp.float32(fan_in))
    weight = jax.random.uniform(kw_, (C_OUT, C_IN, KH, KW),
                                minval=-bound, maxval=bound, dtype=jnp.float32)
    bias = jax.random.uniform(kb, (C_OUT,),
                              minval=-bound, maxval=bound, dtype=jnp.float32)

    out = jax.block_until_ready(spatial_conv(x, weight, bias))

    # Reference: Conv2d (valid, stride 1) + bias, then transpose(1, 2).
    ref = lax.conv_general_dilated(
        x, weight, window_strides=(1, 1), padding="VALID",
        dimension_numbers=("NCHW", "OIHW", "NCHW"))
    ref = ref + bias[None, :, None, None]
    ref = jnp.transpose(ref, (0, 2, 1, 3))

    assert out.shape == (N, H - KH + 1, C_OUT, W - KW + 1), out.shape
    assert jnp.allclose(out, ref, atol=1e-4, rtol=1e-4), \
        float(jnp.max(jnp.abs(out - ref)))

    print("KERNEL_OK")
</pallas_src>

<mosaic_0001>
module attributes {stable_mosaic.version = 11 : i64} {
  func.func @_spatial_conv_kernel(%arg0: i32, %arg1: memref<2x1x384xf32, #tpu.memory_space<vmem>>, %arg2: memref<8x16xf32, #tpu.memory_space<vmem>>, %arg3: memref<1x8x512xf32, #tpu.memory_space<vmem>>, %arg4: memref<16x512xf32, #tpu.memory_space<vmem>>) attributes {dimension_semantics = [#tpu.dimension_semantics<parallel>], iteration_bounds = array<i64: 1>, scalar_prefetch = 0 : i64, scratch_operands = 1 : i64, tpu.core_type = #tpu.core_type<tc>, window_params = [{transform_indices = @transform_0, window_bounds = array<i64: 2, 1, 384>}, {pipeline_mode = #tpu.pipeline_mode<synchronous>, transform_indices = @transform_1, window_bounds = array<i64: 8, 16>}, {transform_indices = @transform_2, window_bounds = array<i64: 1, 8, 512>}]} {
    %cst = arith.constant 0.000000e+00 : f32
    %0 = vector.broadcast %cst : f32 to vector<6x512xf32>
    %c10 = arith.constant 10 : index
    %c0 = arith.constant 0 : index
    %1 = vector.load %arg4[%c10, %c0] : memref<16x512xf32, #tpu.memory_space<vmem>>, vector<6x512xf32>
    tpu.vector_store %arg4[%c10, %c0], %0 {strides = array<i32>} : memref<16x512xf32, #tpu.memory_space<vmem>>, vector<6x512xf32>,
    %cst_0 = arith.constant 1.000000e+00 : f32
    %2 = vector.broadcast %cst_0 : f32 to vector<1x512xf32>
    %c9 = arith.constant 9 : index
    %c0_1 = arith.constant 0 : index
    %3 = vector.load %arg4[%c9, %c0_1] : memref<16x512xf32, #tpu.memory_space<vmem>>, vector<1x512xf32>
    tpu.vector_store %arg4[%c9, %c0_1], %2 {strides = array<i32>} : memref<16x512xf32, #tpu.memory_space<vmem>>, vector<1x512xf32>,
    %c0_i32 = arith.constant 0 : i32
    %c0_i32_2 = arith.constant 0 : i32
    %c0_i32_3 = arith.constant 0 : i32
    %4 = tpu.memref_slice %arg1[%c0_i32, %c0_i32_2, %c0_i32_3] : memref<2x1x384xf32, #tpu.memory_space<vmem>> -> memref<1x1x384xf32, #tpu.memory_space<vmem>>
    %5 = tpu.memref_squeeze %4 : memref<1x1x384xf32, #tpu.memory_space<vmem>> -> memref<1x384xf32, #tpu.memory_space<vmem>>
    %c0_4 = arith.constant 0 : index
    %c0_5 = arith.constant 0 : index
    %6 = vector.load %5[%c0_4, %c0_5] : memref<1x384xf32, #tpu.memory_space<vmem>>, vector<1x256xf32>
    %c0_6 = arith.constant 0 : index
    %c0_7 = arith.constant 0 : index
    %7 = vector.load %arg4[%c0_6, %c0_7] : memref<16x512xf32, #tpu.memory_space<vmem>>, vector<1x256xf32>
    tpu.vector_store %arg4[%c0_6, %c0_7], %6 {strides = array<i32>} : memref<16x512xf32, #tpu.memory_space<vmem>>, vector<1x256xf32>,
    %c0_i32_8 = arith.constant 0 : i32
    %c0_i32_9 = arith.constant 0 : i32
    %c0_i32_10 = arith.constant 0 : i32
    %8 = tpu.memref_slice %arg1[%c0_i32_8, %c0_i32_9, %c0_i32_10] : memref<2x1x384xf32, #tpu.memory_space<vmem>> -> memref<1x1x384xf32, #tpu.memory_space<vmem>>
    %9 = tpu.memref_squeeze %8 : memref<1x1x384xf32, #tpu.memory_space<vmem>> -> memref<1x384xf32, #tpu.memory_space<vmem>>
    %c0_11 = arith.constant 0 : index
    %c1 = arith.constant 1 : index
    %10 = vector.load %9[%c0_11, %c1] : memref<1x384xf32, #tpu.memory_space<vmem>>, vector<1x256xf32>
    %c1_12 = arith.constant 1 : index
    %c0_13 = arith.constant 0 : index
    %11 = vector.load %arg4[%c1_12, %c0_13] : memref<16x512xf32, #tpu.memory_space<vmem>>, vector<1x256xf32>
    tpu.vector_store %arg4[%c1_12, %c0_13], %10 {strides = array<i32>} : memref<16x512xf32, #tpu.memory_space<vmem>>, vector<1x256xf32>,
    %c0_i32_14 = arith.constant 0 : i32
    %c0_i32_15 = arith.constant 0 : i32
    %c0_i32_16 = arith.constant 0 : i32
    %12 = tpu.memref_slice %arg1[%c0_i32_14, %c0_i32_15, %c0_i32_16] : memref<2x1x384xf32, #tpu.memory_space<vmem>> -> memref<1x1x384xf32, #tpu.memory_space<vmem>>
    %13 = tpu.memref_squeeze %12 : memref<1x1x384xf32, #tpu.memory_space<vmem>> -> memref<1x384xf32, #tpu.memory_space<vmem>>
    %c0_17 = arith.constant 0 : index
    %c2 = arith.constant 2 : index
    %14 = vector.load %13[%c0_17, %c2] : memref<1x384xf32, #tpu.memory_space<vmem>>, vector<1x256xf32>
    %c2_18 = arith.constant 2 : index
    %c0_19 = arith.constant 0 : index
    %15 = vector.load %arg4[%c2_18, %c0_19] : memref<16x512xf32, #tpu.memory_space<vmem>>, vector<1x256xf32>
    tpu.vector_store %arg4[%c2_18, %c0_19], %14 {strides = array<i32>} : memref<16x512xf32, #tpu.memory_space<vmem>>, vector<1x256xf32>,
    %c0_i32_20 = arith.constant 0 : i32
    %c0_i32_21 = arith.constant 0 : i32
    %c0_i32_22 = arith.constant 0 : i32
    %16 = tpu.memref_slice %arg1[%c0_i32_20, %c0_i32_21, %c0_i32_22] : memref<2x1x384xf32, #tpu.memory_space<vmem>> -> memref<1x1x384xf32, #tpu.memory_space<vmem>>
    %17 = tpu.memref_squeeze %16 : memref<1x1x384xf32, #tpu.memory_space<vmem>> -> memref<1x384xf32, #tpu.memory_space<vmem>>
    %c0_23 = arith.constant 0 : index
    %c16 = arith.constant 16 : index
    %18 = vector.load %17[%c0_23, %c16] : memref<1x384xf32, #tpu.memory_space<vmem>>, vector<1x256xf32>
    %c3 = arith.constant 3 : index
    %c0_24 = arith.constant 0 : index
    %19 = vector.load %arg4[%c3, %c0_24] : memref<16x512xf32, #tpu.memory_space<vmem>>, vector<1x256xf32>
    tpu.vector_store %arg4[%c3, %c0_24], %18 {strides = array<i32>} : memref<16x512xf32, #tpu.memory_space<vmem>>, vector<1x256xf32>,
    %c0_i32_25 = arith.constant 0 : i32
    %c0_i32_26 = arith.constant 0 : i32
    %c0_i32_27 = arith.constant 0 : i32
    %20 = tpu.memref_slice %arg1[%c0_i32_25, %c0_i32_26, %c0_i32_27] : memref<2x1x384xf32, #tpu.memory_space<vmem>> -> memref<1x1x384xf32, #tpu.memory_space<vmem>>
    %21 = tpu.memref_squeeze %20 : memref<1x1x384xf32, #tpu.memory_space<vmem>> -> memref<1x384xf32, #tpu.memory_space<vmem>>
    %c0_28 = arith.constant 0 : index
    %c17 = arith.constant 17 : index
    %22 = vector.load %21[%c0_28, %c17] : memref<1x384xf32, #tpu.memory_space<vmem>>, vector<1x256xf32>
    %c4 = arith.constant 4 : index
    %c0_29 = arith.constant 0 : index
    %23 = vector.load %arg4[%c4, %c0_29] : memref<16x512xf32, #tpu.memory_space<vmem>>, vector<1x256xf32>
    tpu.vector_store %arg4[%c4, %c0_29], %22 {strides = array<i32>} : memref<16x512xf32, #tpu.memory_space<vmem>>, vector<1x256xf32>,
    %c0_i32_30 = arith.constant 0 : i32
    %c0_i32_31 = arith.constant 0 : i32
    %c0_i32_32 = arith.constant 0 : i32
    %24 = tpu.memref_slice %arg1[%c0_i32_30, %c0_i32_31, %c0_i32_32] : memref<2x1x384xf32, #tpu.memory_space<vmem>> -> memref<1x1x384xf32, #tpu.memory_space<vmem>>
    %25 = tpu.memref_squeeze %24 : memref<1x1x384xf32, #tpu.memory_space<vmem>> -> memref<1x384xf32, #tpu.memory_space<vmem>>
    %c0_33 = arith.constant 0 : index
    %c18 = arith.constant 18 : index
    %26 = vector.load %25[%c0_33, %c18] : memref<1x384xf32, #tpu.memory_space<vmem>>, vector<1x256xf32>
    %c5 = arith.constant 5 : index
    %c0_34 = arith.constant 0 : index
    %27 = vector.load %arg4[%c5, %c0_34] : memref<16x512xf32, #tpu.memory_space<vmem>>, vector<1x256xf32>
    tpu.vector_store %arg4[%c5, %c0_34], %26 {strides = array<i32>} : memref<16x512xf32, #tpu.memory_space<vmem>>, vector<1x256xf32>,
    %c0_i32_35 = arith.constant 0 : i32
    %c0_i32_36 = arith.constant 0 : i32
    %c0_i32_37 = arith.constant 0 : i32
    %28 = tpu.memref_slice %arg1[%c0_i32_35, %c0_i32_36, %c0_i32_37] : memref<2x1x384xf32, #tpu.memory_space<vmem>> -> memref<1x1x384xf32, #tpu.memory_space<vmem>>
    %29 = tpu.memref_squeeze %28 : memref<1x1x384xf32, #tpu.memory_space<vmem>> -> memref<1x384xf32, #tpu.memory_space<vmem>>
    %c0_38 = arith.constant 0 : index
    %c32 = arith.constant 32 : index
    %30 = vector.load %29[%c0_38, %c32] : memref<1x384xf32, #tpu.memory_space<vmem>>, vector<1x256xf32>
    %c6 = arith.constant 6 : index
    %c0_39 = arith.constant 0 : index
    %31 = vector.load %arg4[%c6, %c0_39] : memref<16x512xf32, #tpu.memory_space<vmem>>, vector<1x256xf32>
    tpu.vector_store %arg4[%c6, %c0_39], %30 {strides = array<i32>} : memref<16x512xf32, #tpu.memory_space<vmem>>, vector<1x256xf32>,
    %c0_i32_40 = arith.constant 0 : i32
    %c0_i32_41 = arith.constant 0 : i32
    %c0_i32_42 = arith.constant 0 : i32
    %32 = tpu.memref_slice %arg1[%c0_i32_40, %c0_i32_41, %c0_i32_42] : memref<2x1x384xf32, #tpu.memory_space<vmem>> -> memref<1x1x384xf32, #tpu.memory_space<vmem>>
    %33 = tpu.memref_squeeze %32 : memref<1x1x384xf32, #tpu.memory_space<vmem>> -> memref<1x384xf32, #tpu.memory_space<vmem>>
    %c0_43 = arith.constant 0 : index
    %c33 = arith.constant 33 : index
    %34 = vector.load %33[%c0_43, %c33] : memref<1x384xf32, #tpu.memory_space<vmem>>, vector<1x256xf32>
    %c7 = arith.constant 7 : index
    %c0_44 = arith.constant 0 : index
    %35 = vector.load %arg4[%c7, %c0_44] : memref<16x512xf32, #tpu.memory_space<vmem>>, vector<1x256xf32>
    tpu.vector_store %arg4[%c7, %c0_44], %34 {strides = array<i32>} : memref<16x512xf32, #tpu.memory_space<vmem>>, vector<1x256xf32>,
    %c0_i32_45 = arith.constant 0 : i32
    %c0_i32_46 = arith.constant 0 : i32
    %c0_i32_47 = arith.constant 0 : i32
    %36 = tpu.memref_slice %arg1[%c0_i32_45, %c0_i32_46, %c0_i32_47] : memref<2x1x384xf32, #tpu.memory_space<vmem>> -> memref<1x1x384xf32, #tpu.memory_space<vmem>>
    %37 = tpu.memref_squeeze %36 : memref<1x1x384xf32, #tpu.memory_space<vmem>> -> memref<1x384xf32, #tpu.memory_space<vmem>>
    %c0_48 = arith.constant 0 : index
    %c34 = arith.constant 34 : index
    %38 = vector.load %37[%c0_48, %c34] : memref<1x384xf32, #tpu.memory_space<vmem>>, vector<1x256xf32>
    %c8 = arith.constant 8 : index
    %c0_49 = arith.constant 0 : index
    %39 = vector.load %arg4[%c8, %c0_49] : memref<16x512xf32, #tpu.memory_space<vmem>>, vector<1x256xf32>
    tpu.vector_store %arg4[%c8, %c0_49], %38 {strides = array<i32>} : memref<16x512xf32, #tpu.memory_space<vmem>>, vector<1x256xf32>,
    %c1_i32 = arith.constant 1 : i32
    %c0_i32_50 = arith.constant 0 : i32
    %c0_i32_51 = arith.constant 0 : i32
    %40 = tpu.memref_slice %arg1[%c1_i32, %c0_i32_50, %c0_i32_51] : memref<2x1x384xf32, #tpu.memory_space<vmem>> -> memref<1x1x384xf32, #tpu.memory_space<vmem>>
    %41 = tpu.memref_squeeze %40 : memref<1x1x384xf32, #tpu.memory_space<vmem>> -> memref<1x384xf32, #tpu.memory_space<vmem>>
    %c0_52 = arith.constant 0 : index
    %c0_53 = arith.constant 0 : index
    %42 = vector.load %41[%c0_52, %c0_53] : memref<1x384xf32, #tpu.memory_space<vmem>>, vector<1x256xf32>
    %c0_54 = arith.constant 0 : index
    %c256 = arith.constant 256 : index
    %43 = vector.load %arg4[%c0_54, %c256] : memref<16x512xf32, #tpu.memory_space<vmem>>, vector<1x256xf32>
    tpu.vector_store %arg4[%c0_54, %c256], %42 {strides = array<i32>} : memref<16x512xf32, #tpu.memory_space<vmem>>, vector<1x256xf32>,
    %c1_i32_55 = arith.constant 1 : i32
    %c0_i32_56 = arith.constant 0 : i32
    %c0_i32_57 = arith.constant 0 : i32
    %44 = tpu.memref_slice %arg1[%c1_i32_55, %c0_i32_56, %c0_i32_57] : memref<2x1x384xf32, #tpu.memory_space<vmem>> -> memref<1x1x384xf32, #tpu.memory_space<vmem>>
    %45 = tpu.memref_squeeze %44 : memref<1x1x384xf32, #tpu.memory_space<vmem>> -> memref<1x384xf32, #tpu.memory_space<vmem>>
    %c0_58 = arith.constant 0 : index
    %c1_59 = arith.constant 1 : index
    %46 = vector.load %45[%c0_58, %c1_59] : memref<1x384xf32, #tpu.memory_space<vmem>>, vector<1x256xf32>
    %c1_60 = arith.constant 1 : index
    %c256_61 = arith.constant 256 : index
    %47 = vector.load %arg4[%c1_60, %c256_61] : memref<16x512xf32, #tpu.memory_space<vmem>>, vector<1x256xf32>
    tpu.vector_store %arg4[%c1_60, %c256_61], %46 {strides = array<i32>} : memref<16x512xf32, #tpu.memory_space<vmem>>, vector<1x256xf32>,
    %c1_i32_62 = arith.constant 1 : i32
    %c0_i32_63 = arith.constant 0 : i32
    %c0_i32_64 = arith.constant 0 : i32
    %48 = tpu.memref_slice %arg1[%c1_i32_62, %c0_i32_63, %c0_i32_64] : memref<2x1x384xf32, #tpu.memory_space<vmem>> -> memref<1x1x384xf32, #tpu.memory_space<vmem>>
    %49 = tpu.memref_squeeze %48 : memref<1x1x384xf32, #tpu.memory_space<vmem>> -> memref<1x384xf32, #tpu.memory_space<vmem>>
    %c0_65 = arith.constant 0 : index
    %c2_66 = arith.constant 2 : index
    %50 = vector.load %49[%c0_65, %c2_66] : memref<1x384xf32, #tpu.memory_space<vmem>>, vector<1x256xf32>
    %c2_67 = arith.constant 2 : index
    %c256_68 = arith.constant 256 : index
    %51 = vector.load %arg4[%c2_67, %c256_68] : memref<16x512xf32, #tpu.memory_space<vmem>>, vector<1x256xf32>
    tpu.vector_store %arg4[%c2_67, %c256_68], %50 {strides = array<i32>} : memref<16x512xf32, #tpu.memory_space<vmem>>, vector<1x256xf32>,
    %c1_i32_69 = arith.constant 1 : i32
    %c0_i32_70 = arith.constant 0 : i32
    %c0_i32_71 = arith.constant 0 : i32
    %52 = tpu.memref_slice %arg1[%c1_i32_69, %c0_i32_70, %c0_i32_71] : memref<2x1x384xf32, #tpu.memory_space<vmem>> -> memref<1x1x384xf32, #tpu.memory_space<vmem>>
    %53 = tpu.memref_squeeze %52 : memref<1x1x384xf32, #tpu.memory_space<vmem>> -> memref<1x384xf32, #tpu.memory_space<vmem>>
    %c0_72 = arith.constant 0 : index
    %c16_73 = arith.constant 16 : index
    %54 = vector.load %53[%c0_72, %c16_73] : memref<1x384xf32, #tpu.memory_space<vmem>>, vector<1x256xf32>
    %c3_74 = arith.constant 3 : index
    %c256_75 = arith.constant 256 : index
    %55 = vector.load %arg4[%c3_74, %c256_75] : memref<16x512xf32, #tpu.memory_space<vmem>>, vector<1x256xf32>
    tpu.vector_store %arg4[%c3_74, %c256_75], %54 {strides = array<i32>} : memref<16x512xf32, #tpu.memory_space<vmem>>, vector<1x256xf32>,
    %c1_i32_76 = arith.constant 1 : i32
    %c0_i32_77 = arith.constant 0 : i32
    %c0_i32_78 = arith.constant 0 : i32
    %56 = tpu.memref_slice %arg1[%c1_i32_76, %c0_i32_77, %c0_i32_78] : memref<2x1x384xf32, #tpu.memory_space<vmem>> -> memref<1x1x384xf32, #tpu.memory_space<vmem>>
    %57 = tpu.memref_squeeze %56 : memref<1x1x384xf32, #tpu.memory_space<vmem>> -> memref<1x384xf32, #tpu.memory_space<vmem>>
    %c0_79 = arith.constant 0 : index
    %c17_80 = arith.constant 17 : index
    %58 = vector.load %57[%c0_79, %c17_80] : memref<1x384xf32, #tpu.memory_space<vmem>>, vector<1x256xf32>
    %c4_81 = arith.constant 4 : index
    %c256_82 = arith.constant 256 : index
    %59 = vector.load %arg4[%c4_81, %c256_82] : memref<16x512xf32, #tpu.memory_space<vmem>>, vector<1x256xf32>
    tpu.vector_store %arg4[%c4_81, %c256_82], %58 {strides = array<i32>} : memref<16x512xf32, #tpu.memory_space<vmem>>, vector<1x256xf32>,
    %c1_i32_83 = arith.constant 1 : i32
    %c0_i32_84 = arith.constant 0 : i32
    %c0_i32_85 = arith.constant 0 : i32
    %60 = tpu.memref_slice %arg1[%c1_i32_83, %c0_i32_84, %c0_i32_85] : memref<2x1x384xf32, #tpu.memory_space<vmem>> -> memref<1x1x384xf32, #tpu.memory_space<vmem>>
    %61 = tpu.memref_squeeze %60 : memref<1x1x384xf32, #tpu.memory_space<vmem>> -> memref<1x384xf32, #tpu.memory_space<vmem>>
    %c0_86 = arith.constant 0 : index
    %c18_87 = arith.constant 18 : index
    %62 = vector.load %61[%c0_86, %c18_87] : memref<1x384xf32, #tpu.memory_space<vmem>>, vector<1x256xf32>
    %c5_88 = arith.constant 5 : index
    %c256_89 = arith.constant 256 : index
    %63 = vector.load %arg4[%c5_88, %c256_89] : memref<16x512xf32, #tpu.memory_space<vmem>>, vector<1x256xf32>
    tpu.vector_store %arg4[%c5_88, %c256_89], %62 {strides = array<i32>} : memref<16x512xf32, #tpu.memory_space<vmem>>, vector<1x256xf32>,
    %c1_i32_90 = arith.constant 1 : i32
    %c0_i32_91 = arith.constant 0 : i32
    %c0_i32_92 = arith.constant 0 : i32
    %64 = tpu.memref_slice %arg1[%c1_i32_90, %c0_i32_91, %c0_i32_92] : memref<2x1x384xf32, #tpu.memory_space<vmem>> -> memref<1x1x384xf32, #tpu.memory_space<vmem>>
    %65 = tpu.memref_squeeze %64 : memref<1x1x384xf32, #tpu.memory_space<vmem>> -> memref<1x384xf32, #tpu.memory_space<vmem>>
    %c0_93 = arith.constant 0 : index
    %c32_94 = arith.constant 32 : index
    %66 = vector.load %65[%c0_93, %c32_94] : memref<1x384xf32, #tpu.memory_space<vmem>>, vector<1x256xf32>
    %c6_95 = arith.constant 6 : index
    %c256_96 = arith.constant 256 : index
    %67 = vector.load %arg4[%c6_95, %c256_96] : memref<16x512xf32, #tpu.memory_space<vmem>>, vector<1x256xf32>
    tpu.vector_store %arg4[%c6_95, %c256_96], %66 {strides = array<i32>} : memref<16x512xf32, #tpu.memory_space<vmem>>, vector<1x256xf32>,
    %c1_i32_97 = arith.constant 1 : i32
    %c0_i32_98 = arith.constant 0 : i32
    %c0_i32_99 = arith.constant 0 : i32
    %68 = tpu.memref_slice %arg1[%c1_i32_97, %c0_i32_98, %c0_i32_99] : memref<2x1x384xf32, #tpu.memory_space<vmem>> -> memref<1x1x384xf32, #tpu.memory_space<vmem>>
    %69 = tpu.memref_squeeze %68 : memref<1x1x384xf32, #tpu.memory_space<vmem>> -> memref<1x384xf32, #tpu.memory_space<vmem>>
    %c0_100 = arith.constant 0 : index
    %c33_101 = arith.constant 33 : index
    %70 = vector.load %69[%c0_100, %c33_101] : memref<1x384xf32, #tpu.memory_space<vmem>>, vector<1x256xf32>
    %c7_102 = arith.constant 7 : index
    %c256_103 = arith.constant 256 : index
    %71 = vector.load %arg4[%c7_102, %c256_103] : memref<16x512xf32, #tpu.memory_space<vmem>>, vector<1x256xf32>
    tpu.vector_store %arg4[%c7_102, %c256_103], %70 {strides = array<i32>} : memref<16x512xf32, #tpu.memory_space<vmem>>, vector<1x256xf32>,
    %c1_i32_104 = arith.constant 1 : i32
    %c0_i32_105 = arith.constant 0 : i32
    %c0_i32_106 = arith.constant 0 : i32
    %72 = tpu.memref_slice %arg1[%c1_i32_104, %c0_i32_105, %c0_i32_106] : memref<2x1x384xf32, #tpu.memory_space<vmem>> -> memref<1x1x384xf32, #tpu.memory_space<vmem>>
    %73 = tpu.memref_squeeze %72 : memref<1x1x384xf32, #tpu.memory_space<vmem>> -> memref<1x384xf32, #tpu.memory_space<vmem>>
    %c0_107 = arith.constant 0 : index
    %c34_108 = arith.constant 34 : index
    %74 = vector.load %73[%c0_107, %c34_108] : memref<1x384xf32, #tpu.memory_space<vmem>>, vector<1x256xf32>
    %c8_109 = arith.constant 8 : index
    %c256_110 = arith.constant 256 : index
    %75 = vector.load %arg4[%c8_109, %c256_110] : memref<16x512xf32, #tpu.memory_space<vmem>>, vector<1x256xf32>
    tpu.vector_store %arg4[%c8_109, %c256_110], %74 {strides = array<i32>} : memref<16x512xf32, #tpu.memory_space<vmem>>, vector<1x256xf32>,
    %c0_111 = arith.constant 0 : index
    %c0_112 = arith.constant 0 : index
    %76 = vector.load %arg2[%c0_111, %c0_112] : memref<8x16xf32, #tpu.memory_space<vmem>>, vector<8x16xf32>
    %c0_113 = arith.constant 0 : index
    %c0_114 = arith.constant 0 : index
    %77 = vector.load %arg4[%c0_113, %c0_114] : memref<16x512xf32, #tpu.memory_space<vmem>>, vector<16x512xf32>
    %cst_115 = arith.constant dense<0.000000e+00> : vector<8x512xf32>
    %78 = tpu.matmul %76, %77, %cst_115 {dimension_numbers = #tpu.dot_dimension_numbers<[1], [0], [0], [1], [0, 0, 1, 1], [], []>} : vector<8x16xf32>, vector<16x512xf32>, vector<8x512xf32> -> vector<8x512xf32>
    %c0_116 = arith.constant 0 : index
    %c0_117 = arith.constant 0 : index
    %c0_118 = arith.constant 0 : index
    %79 = vector.load %arg3[%c0_116, %c0_117, %c0_118] : memref<1x8x512xf32, #tpu.memory_space<vmem>>, vector<1x8x512xf32>
    %80 = vector.shape_cast %79 : vector<1x8x512xf32> to vector<8x512xf32>
    %81 = vector.shape_cast %78 : vector<8x512xf32> to vector<1x8x512xf32>
    tpu.vector_store %arg3[%c0_116, %c0_117, %c0_118], %81 {strides = array<i32>} : memref<1x8x512xf32, #tpu.memory_space<vmem>>, vector<1x8x512xf32>,
    return
  }
  func.func @transform_0(%arg0: i32) -> (i32, i32, i32) {
    %c0_i32 = arith.constant 0 : i32
    %c0_i32_0 = arith.constant 0 : i32
    %c0_i32_1 = arith.constant 0 : i32
    return %arg0, %c0_i32, %c0_i32_0 : i32, i32, i32
  }
  func.func @transform_1(%arg0: i32) -> (i32, i32) {
    %c0_i32 = arith.constant 0 : i32
    %c0_i32_0 = arith.constant 0 : i32
    %c0_i32_1 = arith.constant 0 : i32
    return %c0_i32, %c0_i32_0 : i32, i32
  }
  func.func @transform_2(%arg0: i32) -> (i32, i32, i32) {
    %c0_i32 = arith.constant 0 : i32
    %c0_i32_0 = arith.constant 0 : i32
    %c0_i32_1 = arith.constant 0 : i32
    return %arg0, %c0_i32, %c0_i32_0 : i32, i32, i32
  }
}

</mosaic_0001>

<bundles_post_ra>
// kernel: tpu_custom_call.1
= control target key start
LH: loop header
LB: loop body
LE: loop exit
PB: predicated region body
PF: predicated region fallthrough
CT: control target
= control target key end

     0   :  { %7 = vsyncpa [#allocation4], 0  ;;  %s629_s0 = inlined_call_operand.hbm [shape: f32[2,1,384], index: 0, kind: input, shape index: {}]   ;;  %s630_s1 = inlined_call_operand.hbm [shape: f32[8,16], index: 1, kind: input, shape index: {}]   ;;  %s631_s2 = inlined_call_operand.hbm [shape: f32[1,8,512], index: 2, kind: output, shape index: {}]  }
   0x1   :  { %8 = vsyncpa [#allocation7], 0 }
   0x2   :  { %9 = vsyncpa [#allocation5], 0  ;;  %s499_s9 = smov [#allocation3]   ;;  %s427_s13 = scalar_lea.hbm %s629_s0, 96 }
   0x3   :  { %s15_s10 = sshll.u32 %s499_s9, 4  ;;  %p428_p0 = scmp.ne.s32.totalorder %s629_s0, %s427_s13  ;;  %s16_s10 = int_to_ptr.vmem [resolvable:$true] %s15_s10 }
   0x4   :  { %p431_p1 = scmp.lt.u32.totalorder %s427_s13, %s629_s0 }
   0x6   :  { %p433_p2 = pnand %p431_p1, %p428_p0 }
   0x8   :  { %436 = shalt.err (!%p433_p2)
}
   0x9   :  { %s437_s18 = scalar_lea.vmem %s16_s10, 96  ;;  %p442_p4 = scmp.lt.s32.totalorder %s16_s10, %s16_s10 }
   0xa   :  { %p438_p3 = scmp.ne.s32.totalorder %s16_s10, %s437_s18  ;;  %p443_p5 = scmp.lt.s32.totalorder %s437_s18, %s437_s18 }
   0xc   :  { %p444_p6 = por %p443_p5, %p442_p4 }
   0xe   :  { %p445_p7 = pnand %p444_p6, %p438_p3 }
  0x10   :  { %448 = shalt.err (!%p445_p7)
}
  0x11   :  { %s500_s19 = smov 48   ;;  %s501_s20 = smov 3  }
  0x12   :  { %21 = dma.hbm_to_vmem [thread:$0]  %s629_s0, 96, %s16_s10, [#allocation4], %s500_s19, %s500_s19, %s501_s20  }
  0x13   :  { %s502_s23 = smov [#allocation6]   ;;  %s449_s27 = scalar_lea.hbm %s630_s1, 128 }
  0x14   :  { %s28_s24 = sshll.u32 %s502_s23, 4  ;;  %p450_p8 = scmp.ne.s32.totalorder %s630_s1, %s449_s27  ;;  %s29_s24 = int_to_ptr.vmem [resolvable:$true] %s28_s24 }
  0x15   :  { %p453_p9 = scmp.lt.u32.totalorder %s449_s27, %s630_s1 }
  0x17   :  { %p455_p10 = pnand %p453_p9, %p450_p8 }
  0x19   :  { %458 = shalt.err (!%p455_p10)
}
  0x1a   :  { %s459_s4 = scalar_lea.vmem %s29_s24, 128  ;;  %p464_p12 = scmp.lt.s32.totalorder %s29_s24, %s29_s24 }
  0x1b   :  { %p460_p11 = scmp.ne.s32.totalorder %s29_s24, %s459_s4  ;;  %p465_p13 = scmp.lt.s32.totalorder %s459_s4, %s459_s4 }
  0x1d   :  { %p466_p0 = por %p465_p13, %p464_p12 }
  0x1f   :  { %p467_p1 = pnand %p466_p0, %p460_p11 }
  0x21   :  { %470 = shalt.err (!%p467_p1)
}
  0x22   :  { %31 = dma.hbm_to_vmem [thread:$0]  %s630_s1, 128, %s29_s24, [#allocation7]  }
  0x23   :  { %493 = dma.done.wait [#allocation4], 96  }
  0x24   :  { %494 = vsyncadd [#allocation4], 4294967200 }
  0x25   :  { %495 = dma.done.wait [#allocation7], 128  }
  0x26   :  { %496 = vsyncadd [#allocation7], 4294967168  ;;  %v76_v0 = vld [vmem:[#allocation3] sm:$0x7]  ;;  %s503_s6 = smov 112   ;;  %s504_s7 = smov 127   ;;  %v42_v2 = vlaneseq }
  0x27   :  { %v54_v1 = vld [vmem:[#allocation3] sm:$0x7]  ;;  %78 = vrot.lane.b32.xlu1 %v76_v0, %s503_s6  ;;  %s505_s8 = smov 111   ;;  %s506_s9 = smov 126   ;;  %v507_v8 = vmov 0.0   ;;  %v508_v9 = vmov 1.0  }
  0x28   :  { %56 = vrot.lane.b32.xlu0 %v54_v1, %s504_s7  ;;  %v87_v3 = vld [vmem:[#allocation3] sm:$0x7]  ;;  %vm556_vm0 = vcmp.lt.s32.totalorder %v42_v2, 256  ;;  %vm44_vm1 = vcmp.lt.s32.totalorder %v42_v2, 512  ;;  %39 = vst [vmem:[#allocation2 + $0x28] sm:$0xfc] %v507_v8  ;;  %304 = vmatprep.mubr.f32.mxu0 %v507_v8 }
  0x29   :  { %v65_v4 = vld [vmem:[#allocation3] sm:$0x7]  ;;  %47 = vst.msk [vmem:[#allocation2 + $0x21] ss:$8 sm:$0xf] %vm44_vm1, %v508_v9  ;;  %375 = vmatprep.mubr.f32.mxu1 %v507_v8  ;;  %s509_s1 = smov 96  }
  0x2a   :  { %v109_v6 = vld [vmem:[#allocation3] sm:$0x7]  ;;  %38 = vst [vmem:[#allocation2 + $0x20] sm:$0xfc] %v507_v8  ;;  %40 = vst [vmem:[#allocation2 + $0x30] sm:$0xfc] %v507_v8 }
  0x2b   :  { %89 = vrot.lane.b32.xlu1 %v87_v3, %s505_s8  ;;  %v98_v7 = vld [vmem:[#allocation3] sm:$0x7]  ;;  %41 = vst [vmem:[#allocation2 + $0x38] sm:$0xfc] %v507_v8  ;;  %s510_s10 = smov 110   ;;  %s511_s11 = smov 94  }
  0x2c   :  { %67 = vrot.lane.b32.xlu0 %v65_v4, %s506_s9  ;;  %v49_v10 = vld [vmem:[#allocation3] sm:$0x3]  ;;  %s512_s12 = smov 95   ;;  %v157_v13 = vld [vmem:[#allocation3 + $0x3] sm:$0x7]  ;;  %vm81_vm2 = vcmask 916480  }
  0x2d   :  { %52 = vst.msk [vmem:[#allocation2] ss:$8 sm:$0x3] %vm556_vm0, %v49_v10  ;;  %v131_v11 = vld [vmem:[#allocation3] sm:$0x7]  ;;  %vm59_vm3 = vcmask 1039360  }
  0x2e   :  { %v120_v12 = vld [vmem:[#allocation3] sm:$0x7]  ;;  %v147_v14 = vld [vmem:[#allocation3 + $0x3] sm:$0x7]  ;;  %vm92_vm4 = vcmask 908288   ;;  %vm70_vm5 = vcmask 1031168  }
  0x2f   :  { %111 = vrot.lane.b32.xlu1 %v109_v6, %s509_s1  ;;  %v177_v15 = vld [vmem:[#allocation3 + $0x3] sm:$0x7]  ;;  %vm114_vm6 = vcmask 785408   ;;  %vm103_vm7 = vcmask 900096   ;;  %vm136_vm8 = vcmask 769024   ;;  %vm125_vm9 = vcmask 777216  }
  0x30   :  { %100 = vrot.lane.b32.xlu0 %v98_v7, %s510_s10  ;;  %v167_v16 = vld [vmem:[#allocation3 + $0x3] sm:$0x7]  ;;  %v227_v7 = vld [vmem:[#allocation6] sm:$0xff]  ;;  %vm236_vm10 = vcmask 130048   ;;  %s513_s13 = smov [#allocation8]  }
  0x31   :  { %v143_v17 = vld [vmem:[#allocation3 + $0x3] sm:$0x3]  ;;  %s392_s14 = sshll.u32 %s513_s13, 4  ;;  %s393_s14 = int_to_ptr.vmem [resolvable:$true] %s392_s14 }
  0x32   :  { %145 = vst.msk [vmem:[#allocation2 + $0x10] ss:$8 sm:$0x3] %vm556_vm0, %v143_v17  ;;  %v197_v18 = vld [vmem:[#allocation3 + $0x3] sm:$0x7]  ;;  %s471_s15 = scalar_lea.vmem %s393_s14, 512  ;;  %p476_p3 = scmp.lt.s32.totalorder %s393_s14, %s393_s14 }
  0x33   :  { %133 = vrot.lane.b32.xlu1 %v131_v11, %s511_s11  ;;  %v187_v19 = vld [vmem:[#allocation3 + $0x3] sm:$0x7]  ;;  %p472_p2 = scmp.ne.s32.totalorder %s393_s14, %s471_s15  ;;  %p477_p4 = scmp.lt.s32.totalorder %s471_s15, %s471_s15 }
  0x34   :  { %122 = vrot.lane.b32.xlu0 %v120_v12, %s512_s12  ;;  %v217_v20 = vld [vmem:[#allocation3 + $0x3] sm:$0x7] }
  0x35   :  { %v207_v21 = vld [vmem:[#allocation3 + $0x3] sm:$0x7]  ;;  %p478_p5 = por %p477_p4, %p476_p3 }
  0x37   :  { %159 = vrot.lane.b32.xlu1 %v157_v13, %s506_s9  ;;  %p479_p6 = pnand %p478_p5, %p472_p2 }
  0x38   :  { %149 = vrot.lane.b32.xlu0 %v147_v14, %s504_s7 }
  0x3b   :  { %179 = vrot.lane.b32.xlu1 %v177_v15, %s505_s8 }
  0x3c   :  { %169 = vrot.lane.b32.xlu0 %v167_v16, %s503_s6 }
  0x3f   :  { %199 = vrot.lane.b32.xlu1 %v197_v18, %s509_s1 }
  0x40   :  { %189 = vrot.lane.b32.xlu0 %v187_v19, %s510_s10 }
  0x43   :  { %219 = vrot.lane.b32.xlu1 %v217_v20, %s511_s11 }
  0x44   :  { %209 = vrot.lane.b32.xlu0 %v207_v21, %s512_s12 }
  0x99   :  { %v79_v22 = vpop.permute.xlu1 %78 }
  0x9a   :  { %v57_v23 = vpop.permute.xlu0 %56  ;;  %v80_v24 = vrot.slane %v79_v22, 1 }
  0x9b   :  { %v58_v25 = vrot.slane %v57_v23, 1 }
  0x9c   :  { %v82_v26 = vsel %vm81_vm2, %v79_v22, %v80_v24 }
  0x9d   :  { %v60_v27 = vsel %vm59_vm3, %v57_v23, %v58_v25  ;;  %85 = vst.msk [vmem:[#allocation2 + $0x3] ss:$8 sm:$0x3] %vm556_vm0, %v82_v26  ;;  %v90_v28 = vpop.permute.xlu1 %89 }
  0x9e   :  { %63 = vst.msk [vmem:[#allocation2 + $0x1] ss:$8 sm:$0x3] %vm556_vm0, %v60_v27  ;;  %v68_v29 = vpop.permute.xlu0 %67  ;;  %v91_v30 = vrot.slane %v90_v28, 1 }
  0x9f   :  { %v69_v31 = vrot.slane %v68_v29, 1 }
  0xa0   :  { %v93_v32 = vsel %vm92_vm4, %v90_v28, %v91_v30 }
  0xa1   :  { %v71_v33 = vsel %vm70_vm5, %v68_v29, %v69_v31  ;;  %96 = vst.msk [vmem:[#allocation2 + $0x4] ss:$8 sm:$0x3] %vm556_vm0, %v93_v32  ;;  %v112_v34 = vpop.permute.xlu1 %111 }
  0xa2   :  { %74 = vst.msk [vmem:[#allocation2 + $0x2] ss:$8 sm:$0x3] %vm556_vm0, %v71_v33  ;;  %v101_v35 = vpop.permute.xlu0 %100  ;;  %v113_v36 = vrot.slane %v112_v34, 1 }
  0xa3   :  { %v102_v37 = vrot.slane %v101_v35, 1 }
  0xa4   :  { %v115_v38 = vsel %vm114_vm6, %v112_v34, %v113_v36 }
  0xa5   :  { %v104_v39 = vsel %vm103_vm7, %v101_v35, %v102_v37  ;;  %118 = vst.msk [vmem:[#allocation2 + $0x6] ss:$8 sm:$0x3] %vm556_vm0, %v115_v38  ;;  %v134_v40 = vpop.permute.xlu1 %133 }
  0xa6   :  { %107 = vst.msk [vmem:[#allocation2 + $0x5] ss:$8 sm:$0x3] %vm556_vm0, %v104_v39  ;;  %v123_v41 = vpop.permute.xlu0 %122  ;;  %v135_v42 = vrot.slane %v134_v40, 1 }
  0xa7   :  { %v124_v43 = vrot.slane %v123_v41, 1 }
  0xa8   :  { %v137_v44 = vsel %vm136_vm8, %v134_v40, %v135_v42 }
  0xa9   :  { %v126_v45 = vsel %vm125_vm9, %v123_v41, %v124_v43  ;;  %140 = vst.msk [vmem:[#allocation2 + $0x20] ss:$8 sm:$0x3] %vm556_vm0, %v137_v44  ;;  %v160_v46 = vpop.permute.xlu1 %159 }
  0xaa   :  { %129 = vst.msk [vmem:[#allocation2 + $0x7] ss:$8 sm:$0x3] %vm556_vm0, %v126_v45  ;;  %v150_v47 = vpop.permute.xlu0 %149  ;;  %v161_v48 = vrot.slane %v160_v46, 1 }
  0xab   :  { %v151_v49 = vrot.slane %v150_v47, 1 }
  0xac   :  { %v162_v50 = vsel %vm70_vm5, %v160_v46, %v161_v48 }
  0xad   :  { %v152_v51 = vsel %vm59_vm3, %v150_v47, %v151_v49  ;;  %165 = vst.msk [vmem:[#allocation2 + $0x12] ss:$8 sm:$0x3] %vm556_vm0, %v162_v50  ;;  %v180_v52 = vpop.permute.xlu1 %179 }
  0xae   :  { %155 = vst.msk [vmem:[#allocation2 + $0x11] ss:$8 sm:$0x3] %vm556_vm0, %v152_v51  ;;  %v170_v53 = vpop.permute.xlu0 %169  ;;  %v181_v54 = vrot.slane %v180_v52, 1 }
  0xaf   :  { %v171_v55 = vrot.slane %v170_v53, 1 }
  0xb0   :  { %v182_v56 = vsel %vm92_vm4, %v180_v52, %v181_v54  ;;  %v233_v59 = vld [vmem:[#allocation2 + $0x28] sm:$0xff]  ;;  %v232_v0 = vld [vmem:[#allocation2 + $0x20] sm:$0xff] }
  0xb1   :  { %v172_v57 = vsel %vm81_vm2, %v170_v53, %v171_v55  ;;  %v229_v58 = vld [vmem:[#allocation2 + $0x8] sm:$0xff]  ;;  %v228_v60 = vld [vmem:[#allocation2] sm:$0xff]  ;;  %185 = vst.msk [vmem:[#allocation2 + $0x14] ss:$8 sm:$0x3] %vm556_vm0, %v182_v56  ;;  %v200_v61 = vpop.permute.xlu1 %199 }
  0xb2   :  { %175 = vst.msk [vmem:[#allocation2 + $0x13] ss:$8 sm:$0x3] %vm556_vm0, %v172_v57  ;;  %v190_v62 = vpop.permute.xlu0 %189  ;;  %v404_v63 = vpack.c.bf16 %v233_v59, %v229_v58  ;;  %v201_v1 = vrot.slane %v200_v61, 1  ;;  %v406_v3 = vpack.c.bf16 %v232_v0, %v228_v60 }
  0xb3   :  { %v191_v2 = vrot.slane %v190_v62, 1 }
  0xb4   :  { %405 = vmatprep.subr.bf16.mxu0 %v404_v63  ;;  %v202_v4 = vsel %vm114_vm6, %v200_v61, %v201_v1 }
  0xb5   :  { %v192_v6 = vsel %vm103_vm7, %v190_v62, %v191_v2  ;;  %407 = vmatpush1.bf16.msra.mxu0 %v406_v3  ;;  %205 = vst.msk [vmem:[#allocation2 + $0x16] ss:$8 sm:$0x3] %vm556_vm0, %v202_v4  ;;  %v220_v8 = vpop.permute.xlu1 %219 }
  0xb6   :  { %195 = vst.msk [vmem:[#allocation2 + $0x15] ss:$8 sm:$0x3] %vm556_vm0, %v192_v6  ;;  %v210_v9 = vpop.permute.xlu0 %209  ;;  %v221_v10 = vrot.slane %v220_v8, 1 }
  0xb7   :  { %v211_v11 = vrot.slane %v210_v9, 1 }
  0xb8   :  { %402 = vmatmul.mubr.msk.f32.vlgmr.msra.gmra.mrb[0].mxu0 %vm236_vm10, %v227_v7  ;;  %v222_v12 = vsel %vm136_vm8, %v220_v8, %v221_v10 }
  0xb9   :  { %v212_v13 = vsel %vm125_vm9, %v210_v9, %v211_v11  ;;  %225 = vst.msk [vmem:[#allocation2 + $0x30] ss:$8 sm:$0x3] %vm556_vm0, %v222_v12 }
  0xba   :  { %215 = vst.msk [vmem:[#allocation2 + $0x17] ss:$8 sm:$0x3] %vm556_vm0, %v212_v13 }
  0xc0   :  { %v235_v15 = vld [vmem:[#allocation2 + $0x38] sm:$0xff]  ;;  %v234_v18 = vld [vmem:[#allocation2 + $0x30] sm:$0xff] }
  0xc1   :  { %v231_v14 = vld [vmem:[#allocation2 + $0x18] sm:$0xff]  ;;  %v230_v16 = vld [vmem:[#allocation2 + $0x10] sm:$0xff] }
  0xc2   :  { %v408_v17 = vpack.c.bf16 %v235_v15, %v231_v14  ;;  %v410_v19 = vpack.c.bf16 %v234_v18, %v230_v16 }
  0xc4   :  { %409 = vmatprep.subr.bf16.mxu1 %v408_v17 }
  0xc5   :  { %411 = vmatpush1.bf16.msra.mxu1 %v410_v19 }
  0xc8   :  { %403 = vmatmul.mubr.msk.f32.vlgmr.msra.gmra.mrb[0].mxu1 %vm236_vm10, %v227_v7 }
 0x18b   :  { %v306_v20 = vpop.f32.mrb[0].mxu0 }
 0x18c   :  { %382 = vst [vmem:[#allocation8] sm:$0xff] %v306_v20  ;;  %v308_v21 = vpop.f32.mrb[1].mxu0 }
 0x18d   :  { %383 = vst [vmem:[#allocation8 + $0x8] sm:$0xff] %v308_v21 }
 0x19b   :  { %v377_v22 = vpop.f32.mrb[0].mxu1 }
 0x19c   :  { %384 = vst [vmem:[#allocation8 + $0x10] sm:$0xff] %v377_v22  ;;  %v379_v5 = vpop.f32.mrb[1].mxu1 }
 0x19d   :  { %385 = vst [vmem:[#allocation8 + $0x18] sm:$0xff] %v379_v5 }
 0x19e   :  { %482 = shalt.err (!%p479_p6)
}
 0x19f   :  { %s483_s18 = scalar_lea.hbm %s631_s2, 512 }
 0x1a0   :  { %p484_p7 = scmp.ne.s32.totalorder %s631_s2, %s483_s18  ;;  %p487_p8 = scmp.lt.u32.totalorder %s483_s18, %s631_s2 }
 0x1a2   :  { %p489_p9 = pnand %p487_p8, %p484_p7 }
 0x1a4   :  { %492 = shalt.err (!%p489_p9)
}
 0x1a5   :  { %395 = dma.vmem_to_hbm [thread:$0]  %s393_s14, 512, %s631_s2, [#allocation5]  }
 0x1a6   :  { %497 = dma.done.wait [#allocation5], 512  }
 0x1a7   :  { %498 = vsyncadd [#allocation5], 4294966784 }
 0x1a8   :  { %399 = vsyncpa [#allocation4], 1 }
 0x1a9   :  { %400 = vsyncpa [#allocation7], 1 }
 0x1aa   :  { %401 = vsyncpa [#allocation5], 1 }

</bundles_post_ra>
